<compile_context>
chip_gen: v7x
topology: tpu7x:2x2x1
jax: 0.10.0
libtpu: 0.0.40
codegen_flags: <defaults>
</compile_context>

<pallas_src>
import functools

import jax
import jax.numpy as jnp
from jax.experimental import pallas as pl
from jax.experimental.pallas import tpu as pltpu


def _fused_mlp_kernel(*refs, num_layers: int, matmul_dtype):
    """refs = (x_ref, w0_ref, b0_ref, w1_ref, b1_ref, ..., o_ref).

    Computes y = (tanh(... tanh(x @ W0 + b0) ...)) @ W_last + b_last with MXU
    operands in `matmul_dtype`, f32 accumulation, f32 elementwise, and a single
    final store.
    """
    x_ref = refs[0]
    o_ref = refs[-1]
    param_refs = refs[1:-1]

    # no-op cast when x is already f32 (convert_element_type to same dtype is
    # dropped by JAX); keeps the activation chain f32 for any input dtype.
    y = x_ref[...].astype(jnp.float32)
    for li in range(num_layers):                 # statically unrolled
        w = param_refs[2 * li][...]              # already matmul_dtype (pre-cast in wrapper)
        b = param_refs[2 * li + 1][...]          # f32, (1, d_out) -> broadcasts over rows
        lhs = y.astype(matmul_dtype)             # no-op for the f32 path
        y = jnp.dot(lhs, w, preferred_element_type=jnp.float32) + b
        if li < num_layers - 1:                  # hidden layers only
            y = jnp.tanh(y)                      # EUP transcendental, f32
    o_ref[...] = y.astype(o_ref.dtype)           # single final store


def mlp_forward(x, params, *, matmul_dtype=jnp.bfloat16, batch_tile=256):
    """Fused forward. Matches MLP.forward: hidden layers get tanh, last is linear.

    x:            (B, d_in)
    params:       list of (W, b) with W: (d_in_l, d_out_l), b: (d_out_l,)
    matmul_dtype: dtype of MXU operands (bf16 default; f32 for exact semantics).
    batch_tile:   rows per grid step when B is large enough to tile (else no grid).
    """
    num_layers = len(params)
    B, d_in = x.shape
    d_out = params[-1][0].shape[1]

    # --- batch tiling decision (dual-TC sharding on v7x; harmless elsewhere).
    use_grid = (batch_tile is not None and B >= 2 * batch_tile
                and B % batch_tile == 0 and batch_tile % 8 == 0)

    # --- lane-dense final store: only bother padding when we're at scale.
    d_out_padded = d_out
    params_eff = list(params)
    if use_grid and d_out % 128 != 0:
        d_out_padded = ((d_out + 127) // 128) * 128
        w_last, b_last = params[-1]
        w_last = jnp.pad(w_last, ((0, 0), (0, d_out_padded - d_out)))
        b_last = jnp.pad(b_last, (0, d_out_padded - d_out))
        params_eff[-1] = (w_last, b_last)

    # --- pack operands: weights pre-cast to the MXU operand dtype (halves DMA
    # bytes for bf16); biases stay f32 so all elementwise work stays f32.
    args = [x]
    for w, b in params_eff:
        args.append(w.astype(matmul_dtype))
        args.append(b.reshape(1, -1).astype(jnp.float32))

    kernel = functools.partial(_fused_mlp_kernel, num_layers=num_layers,
                               matmul_dtype=matmul_dtype)

    # --- advisory cost estimate so XLA overlaps this tiny latency-bound call.
    dims = [d_in] + [w.shape[1] for w, _ in params_eff]
    flops = 2 * B * sum(dims[i] * dims[i + 1] for i in range(num_layers))
    transcendentals = B * sum(dims[1:-1])
    bytes_accessed = int(x.size * x.dtype.itemsize
                         + sum(a.size * a.dtype.itemsize for a in args[1:])
                         + B * d_out_padded * x.dtype.itemsize)
    cost = pl.CostEstimate(flops=flops, transcendentals=transcendentals,
                           bytes_accessed=bytes_accessed)

    out_shape = jax.ShapeDtypeStruct((B, d_out_padded), x.dtype)

    if not use_grid:
        # Tiny operands: no grid, every operand is a full-array block in VMEM.
        in_specs = [pl.BlockSpec(memory_space=pltpu.MemorySpace.VMEM) for _ in args]
        out_spec = pl.BlockSpec(memory_space=pltpu.MemorySpace.VMEM)
        out = pl.pallas_call(
            kernel,
            out_shape=out_shape,
            in_specs=in_specs,
            out_specs=out_spec,
            cost_estimate=cost,
        )(*args)
    else:
        TB = batch_tile
        in_specs = [pl.BlockSpec((TB, d_in), lambda i: (i, 0))]
        for w, b in params_eff:
            in_specs.append(pl.BlockSpec(w.shape, lambda i: (0, 0)))           # resident
            in_specs.append(pl.BlockSpec((1, b.shape[0]), lambda i: (0, 0)))   # resident
        out_spec = pl.BlockSpec((TB, d_out_padded), lambda i: (i, 0))

        # VMEM budget: double-buffered x/out tiles + (conservatively 2x) weights.
        vmem_needed = (2 * TB * d_in * x.dtype.itemsize
                       + 2 * TB * d_out_padded * x.dtype.itemsize
                       + 2 * sum(a.size * a.dtype.itemsize for a in args[1:]))
        vmem_limit = int(min(max(2 * vmem_needed, 32 * 1024 * 1024),
                             64 * 1024 * 1024))  # v7x physical cap

        out = pl.pallas_call(
            kernel,
            out_shape=out_shape,
            grid=(B // TB,),
            in_specs=in_specs,
            out_specs=out_spec,
            cost_estimate=cost,
            compiler_params=pltpu.CompilerParams(
                dimension_semantics=("parallel",),
                vmem_limit_bytes=vmem_limit),
        )(*args)

    if d_out_padded != d_out:
        out = out[:, :d_out]
    return out


def init_mlp_params(key, d_in, d_out, arch_spec):
    """Deterministic init matching nn.Linear shapes (uniform +/- 1/sqrt(fan_in)).

    Weights are stored transposed relative to PyTorch: (in_features, out_features).
    """
    dims = [d_in] + list(arch_spec) + [d_out]
    params = []
    for i in range(len(dims) - 1):
        fan_in, fan_out = dims[i], dims[i + 1]
        key, kw, kb = jax.random.split(key, 3)
        bound = 1.0 / jnp.sqrt(fan_in)
        w = jax.random.uniform(kw, (fan_in, fan_out), jnp.float32, -bound, bound)
        b = jax.random.uniform(kb, (fan_out,), jnp.float32, -bound, bound)
        params.append((w, b))
    return params


def _ref_mlp(x, params):
    y = x
    for w, b in params[:-1]:
        y = jnp.tanh(y @ w + b)
    return y @ params[-1][0] + params[-1][1]


if __name__ == "__main__":
    # MLP(d_in=32, d_out=16, arch_spec=[64, 32], f_act=torch.tanh)
    d_in, d_out = 32, 16
    arch_spec = [64, 32]
    batch = 8

    key = jax.random.PRNGKey(0)
    key, kx = jax.random.split(key)
    x = jax.random.normal(kx, (batch, d_in), jnp.float32)
    params = init_mlp_params(key, d_in, d_out, arch_spec)

    # 1) Exact-semantics path: f32 operands into the MXU (matches PyTorch f32).
    out_f32 = jax.block_until_ready(mlp_forward(x, params, matmul_dtype=jnp.float32))
    assert out_f32.shape == (batch, d_out)
    assert jnp.allclose(out_f32, _ref_mlp(x, params), atol=1e-5, rtol=1e-5)

    # 2) bf16-operand / f32-accumulate path (MXU-native on v6e/v7x).
    out_bf16 = jax.block_until_ready(mlp_forward(x, params))
    assert jnp.allclose(out_bf16, _ref_mlp(x, params), atol=5e-2, rtol=5e-2)

    # 3) Linear-only configuration (arch_spec == []).
    lin_params = init_mlp_params(jax.random.PRNGKey(1), d_in, d_out, [])
    lin_out = jax.block_until_ready(mlp_forward(x, lin_params, matmul_dtype=jnp.float32))
    lin_ref = x @ lin_params[0][0] + lin_params[0][1]
    assert jnp.allclose(lin_out, lin_ref, atol=1e-5, rtol=1e-5)

    # 4) Batch-tiled parallel-grid path with lane-dense (padded) output store.
    big_b = 512
    key, kb = jax.random.split(key)
    xb = jax.random.normal(kb, (big_b, d_in), jnp.float32)
    out_big = jax.block_until_ready(mlp_forward(xb, params, batch_tile=128))
    assert out_big.shape == (big_b, d_out)
    assert jnp.allclose(out_big, _ref_mlp(xb, params), atol=5e-2, rtol=5e-2)

    print("KERNEL_OK")
</pallas_src>

<mosaic_0001>
module attributes {stable_mosaic.version = 11 : i64} {
  func.func @_fused_mlp_kernel(%arg0: memref<8x32xf32, #tpu.memory_space<vmem>>, %arg1: memref<32x64xf32, #tpu.memory_space<vmem>>, %arg2: memref<1x64xf32, #tpu.memory_space<vmem>>, %arg3: memref<64x32xf32, #tpu.memory_space<vmem>>, %arg4: memref<1x32xf32, #tpu.memory_space<vmem>>, %arg5: memref<32x16xf32, #tpu.memory_space<vmem>>, %arg6: memref<1x16xf32, #tpu.memory_space<vmem>>, %arg7: memref<8x16xf32, #tpu.memory_space<vmem>>) attributes {dimension_semantics = [], scalar_prefetch = 0 : i64, scratch_operands = 0 : i64, tpu.core_type = #tpu.core_type<tc>} {
    %c0 = arith.constant 0 : index
    %c0_0 = arith.constant 0 : index
    %0 = vector.load %arg0[%c0, %c0_0] : memref<8x32xf32, #tpu.memory_space<vmem>>, vector<8x32xf32>
    %c0_1 = arith.constant 0 : index
    %c0_2 = arith.constant 0 : index
    %1 = vector.load %arg1[%c0_1, %c0_2] : memref<32x64xf32, #tpu.memory_space<vmem>>, vector<32x64xf32>
    %c0_3 = arith.constant 0 : index
    %c0_4 = arith.constant 0 : index
    %2 = vector.load %arg2[%c0_3, %c0_4] : memref<1x64xf32, #tpu.memory_space<vmem>>, vector<1x64xf32>
    %cst = arith.constant dense<0.000000e+00> : vector<8x64xf32>
    %3 = tpu.matmul %0, %1, %cst {dimension_numbers = #tpu.dot_dimension_numbers<[1], [0], [0], [1], [0, 0, 1, 1], [], []>} : vector<8x32xf32>, vector<32x64xf32>, vector<8x64xf32> -> vector<8x64xf32>
    %4 = vector.broadcast %2 : vector<1x64xf32> to vector<8x64xf32>
    %5 = arith.addf %3, %4 : vector<8x64xf32>
    %6 = math.tanh %5 : vector<8x64xf32>
    %c0_5 = arith.constant 0 : index
    %c0_6 = arith.constant 0 : index
    %7 = vector.load %arg3[%c0_5, %c0_6] : memref<64x32xf32, #tpu.memory_space<vmem>>, vector<64x32xf32>
    %c0_7 = arith.constant 0 : index
    %c0_8 = arith.constant 0 : index
    %8 = vector.load %arg4[%c0_7, %c0_8] : memref<1x32xf32, #tpu.memory_space<vmem>>, vector<1x32xf32>
    %cst_9 = arith.constant dense<0.000000e+00> : vector<8x32xf32>
    %9 = tpu.matmul %6, %7, %cst_9 {dimension_numbers = #tpu.dot_dimension_numbers<[1], [0], [0], [1], [0, 0, 1, 1], [], []>} : vector<8x64xf32>, vector<64x32xf32>, vector<8x32xf32> -> vector<8x32xf32>
    %10 = vector.broadcast %8 : vector<1x32xf32> to vector<8x32xf32>
    %11 = arith.addf %9, %10 : vector<8x32xf32>
    %12 = math.tanh %11 : vector<8x32xf32>
    %c0_10 = arith.constant 0 : index
    %c0_11 = arith.constant 0 : index
    %13 = vector.load %arg5[%c0_10, %c0_11] : memref<32x16xf32, #tpu.memory_space<vmem>>, vector<32x16xf32>
    %c0_12 = arith.constant 0 : index
    %c0_13 = arith.constant 0 : index
    %14 = vector.load %arg6[%c0_12, %c0_13] : memref<1x16xf32, #tpu.memory_space<vmem>>, vector<1x16xf32>
    %cst_14 = arith.constant dense<0.000000e+00> : vector<8x16xf32>
    %15 = tpu.matmul %12, %13, %cst_14 {dimension_numbers = #tpu.dot_dimension_numbers<[1], [0], [0], [1], [0, 0, 1, 1], [], []>} : vector<8x32xf32>, vector<32x16xf32>, vector<8x16xf32> -> vector<8x16xf32>
    %16 = vector.broadcast %14 : vector<1x16xf32> to vector<8x16xf32>
    %17 = arith.addf %15, %16 : vector<8x16xf32>
    %c0_15 = arith.constant 0 : index
    %c0_16 = arith.constant 0 : index
    %18 = vector.load %arg7[%c0_15, %c0_16] : memref<8x16xf32, #tpu.memory_space<vmem>>, vector<8x16xf32>
    tpu.vector_store %arg7[%c0_15, %c0_16], %17 {strides = array<i32>} : memref<8x16xf32, #tpu.memory_space<vmem>>, vector<8x16xf32>,
    return
  }
}

</mosaic_0001>

<bundles_post_ra>
// kernel: tpu_custom_call.1
= control target key start
LH: loop header
LB: loop body
LE: loop exit
PB: predicated region body
PF: predicated region fallthrough
CT: control target
= control target key end

     0   :  { %v426_v3 = vmov 0.0|0.0   ;;  %vm427_vm0 = vmmov 0   ;;  %v428_v6 = vmov 0.0   ;;  %s547_s0 = inlined_call_operand.vmem [shape: f32[8,32], index: 0, kind: input, shape index: {}]   ;;  %s548_s1 = inlined_call_operand.vmem [shape: f32[32,64], index: 1, kind: input, shape index: {}]   ;;  %s549_s2 = inlined_call_operand.vmem [shape: f32[1,64], index: 2, kind: input, shape index: {}]   ;;  %s550_s3 = inlined_call_operand.vmem [shape: f32[64,32], index: 3, kind: input, shape index: {}]   ;;  %s551_s4 = inlined_call_operand.vmem [shape: f32[1,32], index: 4, kind: input, shape index: {}]   ;;  %s552_s5 = inlined_call_operand.vmem [shape: f32[32,16], index: 5, kind: input, shape index: {}]   ;;  %s553_s6 = inlined_call_operand.vmem [shape: f32[1,16], index: 6, kind: input, shape index: {}]   ;;  %s554_s7 = inlined_call_operand.hbm [shape: f32[8,16], index: 7, kind: output, shape index: {}]  }
   0x1   :  { %v28_v0 = vld [vmem:[%s548_s1] sm:$0xff]  ;;  %v29_v1 = vld [vmem:[%s548_s1 + $0x8] sm:$0xff]  ;;  %v30_v2 = vld [vmem:[%s548_s1 + $0x10] sm:$0xff]  ;;  %370 = vmatprep.subr.bf16.mxu0 %v426_v3  ;;  %337 = vmatprep.mubr.msk.f32.mxu0 %vm427_vm0, %v428_v6 }
   0x2   :  { %v371_v4 = vpack.c.bf16 %v29_v1, %v28_v0  ;;  %v31_v5 = vld [vmem:[%s548_s1 + $0x18] sm:$0xff]  ;;  %v114_v7 = vld [vmem:[%s550_s3] sm:$0xff]  ;;  %376 = vmatprep.subr.bf16.mxu1 %v426_v3  ;;  %v115_v8 = vld [vmem:[%s550_s3 + $0x8] sm:$0xff]  ;;  %356 = vmatprep.mubr.msk.f32.mxu1 %vm427_vm0, %v428_v6 }
   0x3   :  { %12 = vsyncpa [#allocation3], 0  ;;  %v374_v9 = vpack.c.bf16 %v31_v5, %v30_v2  ;;  %v377_v10 = vpack.c.bf16 %v115_v8, %v114_v7  ;;  %v27_v11 = vld [vmem:[%s547_s0] sm:$0xff]  ;;  %vm39_vm1 = vcmask 261120   ;;  %v116_v12 = vld [vmem:[%s550_s3 + $0x10] sm:$0xff]  ;;  %vm129_vm2 = vcmask 523264  }
   0x4   :  { %372 = vmatpush3.bf16.msra.mxu0 %v371_v4  ;;  %v117_v13 = vld [vmem:[%s550_s3 + $0x18] sm:$0xff]  ;;  %v118_v15 = vld [vmem:[%s550_s3 + $0x20] sm:$0xff]  ;;  %v119_v16 = vld [vmem:[%s550_s3 + $0x28] sm:$0xff]  ;;  %vm288_vm3 = vcmask 130048  }
   0x5   :  { %373 = vmatprep.subr.bf16.mxu0 %v426_v3  ;;  %378 = vmatpush3.bf16.msra.mxu1 %v377_v10  ;;  %v380_v14 = vpack.c.bf16 %v117_v13, %v116_v12  ;;  %v383_v17 = vpack.c.bf16 %v119_v16, %v118_v15  ;;  %v120_v18 = vld [vmem:[%s550_s3 + $0x30] sm:$0xff]  ;;  %v121_v19 = vld [vmem:[%s550_s3 + $0x38] sm:$0xff]  ;;  %v304_v21 = vld [vmem:[%s549_s2] ss:$0 sm:$0xff] }
   0x6   :  { %379 = vmatprep.subr.bf16.mxu1 %v426_v3  ;;  %v386_v20 = vpack.c.bf16 %v121_v19, %v120_v18  ;;  %v204_v26 = vld [vmem:[%s552_s5] sm:$0xff]  ;;  %v205_v27 = vld [vmem:[%s552_s5 + $0x8] sm:$0xff]  ;;  %v206_v28 = vld [vmem:[%s552_s5 + $0x10] sm:$0xff] }
   0x7   :  { %v389_v29 = vpack.c.bf16 %v205_v27, %v204_v26  ;;  %v207_v30 = vld [vmem:[%s552_s5 + $0x18] sm:$0xff]  ;;  %v306_v32 = vld [vmem:[%s551_s4] ss:$0 sm:$0xff]  ;;  %s429_s5 = smov [#allocation2]  }
   0x8   :  { %375 = vmatpush3.bf16.msra.mxu0 %v374_v9  ;;  %v392_v31 = vpack.c.bf16 %v207_v30, %v206_v28  ;;  %v308_v37 = vld [vmem:[%s553_s6] ss:$0 sm:$0xff]  ;;  %s296_s13 = sshll.u32 %s429_s5, 4  ;;  %s297_s13 = int_to_ptr.vmem [resolvable:$true] %s296_s13 }
   0x9   :  { %388 = vmatprep.subr.bf16.mxu0 %v426_v3  ;;  %381 = vmatpush3.bf16.msra.mxu1 %v380_v14  ;;  %s402_s4 = scalar_lea.vmem %s297_s13, 128  ;;  %p407_p1 = scmp.lt.s32.totalorder %s297_s13, %s297_s13 }
   0xa   :  { %382 = vmatprep.subr.bf16.mxu1 %v426_v3  ;;  %p403_p0 = scmp.ne.s32.totalorder %s297_s13, %s402_s4  ;;  %p408_p2 = scmp.lt.s32.totalorder %s402_s4, %s402_s4 }
   0xb   :  { %338 = vmatmul.mubr.msk.f32.vlgmr.msra.gmra.mrb[0].mxu0 %vm39_vm1, %v27_v11 }
   0xc   :  { %367 = vmatprep.mubr.msk.f32.mxu0 %vm427_vm0, %v428_v6  ;;  %390 = vmatpush3.bf16.msra.mxu0 %v389_v29  ;;  %p409_p3 = por %p408_p2, %p407_p1 }
   0xd   :  { %384 = vmatpush3.bf16.msra.mxu1 %v383_v17  ;;  %391 = vmatprep.subr.bf16.mxu0 %v426_v3 }
   0xe   :  { %385 = vmatprep.subr.bf16.mxu1 %v426_v3  ;;  %p410_p4 = pnand %p409_p3, %p403_p0 }
  0x10   :  { %393 = vmatpush3.bf16.msra.mxu0 %v392_v31 }
  0x11   :  { %387 = vmatpush3.bf16.msra.mxu1 %v386_v20 }
  0xde   :  { %v109_v22 = vpop.f32.mrb[0].mxu0 }
  0xdf   :  { %v110_v23 = vadd.f32 %v304_v21, %v109_v22  ;;  %v339_v24 = vpop.f32.mrb[1].mxu0 }
  0xe1   :  { %398 = vtanh.f32 %v110_v23 }
  0xeb   :  { %v399_v25 = vpop.eup %398 }
  0xec   :  { %357 = vmatmul.mubr.msk.f32.vlgmr.msra.gmra.mrb[0].mxu1 %vm129_vm2, %v399_v25 }
 0x1bf   :  { %v199_v33 = vpop.f32.mrb[0].mxu1 }
 0x1c0   :  { %v200_v34 = vadd.f32 %v306_v32, %v199_v33  ;;  %v358_v35 = vpop.f32.mrb[1].mxu1 }
 0x1c2   :  { %400 = vtanh.f32 %v200_v34 }
 0x1cc   :  { %v401_v36 = vpop.eup %400 }
 0x1cd   :  { %368 = vmatmul.mubr.msk.f32.vlgmr.msra.gmra.mrb[2].mxu0 %vm39_vm1, %v401_v36 }
 0x2a0   :  { %v284_v38 = vpop.f32.mrb[2].mxu0 }
 0x2a1   :  { %v285_v39 = vadd.f32 %v308_v37, %v284_v38  ;;  %v369_v40 = vpop.f32.mrb[3].mxu0 }
 0x2a3   :  { %289 = vst.msk [vmem:[#allocation2] sm:$0xff] %vm288_vm3, %v285_v39 }
 0x2a4   :  { %413 = shalt.err (!%p410_p4)
}
 0x2a5   :  { %s414_s16 = scalar_lea.hbm %s554_s7, 128 }
 0x2a6   :  { %p415_p5 = scmp.ne.s32.totalorder %s554_s7, %s414_s16  ;;  %p418_p6 = scmp.lt.u32.totalorder %s414_s16, %s554_s7 }
 0x2a8   :  { %p420_p7 = pnand %p418_p6, %p415_p5 }
 0x2aa   :  { %423 = shalt.err (!%p420_p7)
}
 0x2ab   :  { %299 = dma.vmem_to_hbm [thread:$0]  %s297_s13, 128, %s554_s7, [#allocation3]  }
 0x2ac   :  { %424 = dma.done.wait [#allocation3], 128  }
 0x2ad   :  { %425 = vsyncadd [#allocation3], 4294967168 }
 0x2ae   :  { %303 = vsyncpa [#allocation3], 1 }

</bundles_post_ra>
